<compile_context>
chip_gen: v7x
topology: tpu7x:2x2x1
jax: 0.10.0
libtpu: 0.0.40
codegen_flags: <defaults>
</compile_context>

<pallas_src>
import functools

import jax
import jax.numpy as jnp
from jax.experimental import pallas as pl
from jax.experimental.pallas import tpu as pltpu


def flow_crt_kernel(x_ref, w1_ref, b1_ref, wms_ref, bms_ref, z_ref, out_ref, *,
                    matmul_dtype):
    """Single-invocation body: conditioner once, all samples in one pass.

    Shapes: x (B, D_cond); w1 (D_cond, H); b1 (1, H); wms (H, 2*D_out);
            bms (1, 2*D_out); z (n_samples, B, D_out); out (n_samples, B, D_out).
    """
    d_out = out_ref.shape[-1]

    # ---- Conditioner MLP on X (hoisted: computed exactly once) -------------
    x = x_ref[...].astype(matmul_dtype)
    w1 = w1_ref[...].astype(matmul_dtype)
    h = jnp.dot(x, w1, preferred_element_type=jnp.float32) + b1_ref[...]
    h = jnp.maximum(h, 0.0)                                   # relu, (B, H) f32

    # ---- Fused second stage: one matmul produces [mu | log_sigma] ----------
    wms = wms_ref[...].astype(matmul_dtype)
    ms = jnp.dot(h.astype(matmul_dtype), wms,
                 preferred_element_type=jnp.float32) + bms_ref[...]   # (B, 2*D_out)
    mu = ms[:, :d_out]                                        # (B, D_out) f32
    # Elementwise tail kept in f32 (EUP exp; no bf16 pack/unpack on v5e).
    sig = jnp.exp(ms[:, d_out:])                              # (B, D_out) f32

    # ---- All n_samples reparameterized samples in one broadcasted pass -----
    out_ref[...] = (mu[None, :, :] + sig[None, :, :] * z_ref[...]).astype(out_ref.dtype)


def flow_crt_forward(x, params, z, *, matmul_dtype=jnp.float32):
    """x: (B, D_cond) f32; z: (n_samples, B, D_out) f32 base noise.
    Returns stacked samples (n_samples, B, D_out), matching torch.stack(samples).

    matmul_dtype=jnp.bfloat16 enables native-rate MXU operands on v6e/v7x
    (accumulation stays f32 via preferred_element_type)."""
    w1, b1, wm, bm, ws, bs = params
    n_samples, B, D_out = z.shape

    # Fuse the two second-stage projections into one wider matmul.
    w_ms = jnp.concatenate([wm, ws], axis=1)                  # (H, 2*D_out)
    b_ms = jnp.concatenate([bm, bs], axis=1)                  # (1, 2*D_out)

    kernel = functools.partial(flow_crt_kernel, matmul_dtype=matmul_dtype)
    vmem_spec = lambda: pl.BlockSpec(memory_space=pltpu.MemorySpace.VMEM)

    return pl.pallas_call(
        kernel,
        out_shape=jax.ShapeDtypeStruct((n_samples, B, D_out), jnp.float32),
        in_specs=[vmem_spec() for _ in range(6)],
        out_specs=vmem_spec(),
    )(x, w1, b1, w_ms, b_ms, z)


def init_params(key, d_cond, hidden, d_out):
    k1, k2, k3 = jax.random.split(key, 3)
    w1 = jax.random.normal(k1, (d_cond, hidden), jnp.float32) * 0.1
    b1 = jnp.zeros((1, hidden), jnp.float32)
    wm = jax.random.normal(k2, (hidden, d_out), jnp.float32) * 0.1
    bm = jnp.zeros((1, d_out), jnp.float32)
    ws = jax.random.normal(k3, (hidden, d_out), jnp.float32) * 0.01
    bs = jnp.zeros((1, d_out), jnp.float32)
    return (w1, b1, wm, bm, ws, bs)


def reference_forward(x, params, z):
    w1, b1, wm, bm, ws, bs = params
    h = jnp.maximum(x @ w1 + b1, 0.0)
    mu = h @ wm + bm
    log_sig = h @ ws + bs
    return mu[None] + jnp.exp(log_sig)[None] * z


if __name__ == "__main__":
    key = jax.random.PRNGKey(0)
    k_x, k_z, k_p = jax.random.split(key, 3)

    n_samples = 4      # cfg.crt.mcmc_steps
    B = 8              # batch (one sublane tile)
    D_cond = 128       # conditioning feature dim (lane-aligned)
    H = 128            # conditioner hidden width (lane-aligned)
    D_out = 128        # sampled feature dim (lane-aligned -> unmasked stores)

    x = jax.random.normal(k_x, (B, D_cond), jnp.float32)
    z = jax.random.normal(k_z, (n_samples, B, D_out), jnp.float32)
    params = init_params(k_p, D_cond, H, D_out)

    out = flow_crt_forward(x, params, z)
    out = jax.block_until_ready(out)

    ref = reference_forward(x, params, z)
    assert out.shape == (n_samples, B, D_out)
    # Tolerance allows for minor differences in f32-matmul pass decomposition
    # between the Mosaic kernel and XLA's default dot precision on TPU.
    assert jnp.allclose(out, ref, atol=1e-3, rtol=1e-3)

    print("KERNEL_OK")
</pallas_src>

<mosaic_0001>
module attributes {stable_mosaic.version = 11 : i64} {
  func.func @flow_crt_kernel(%arg0: memref<8x128xf32, #tpu.memory_space<vmem>>, %arg1: memref<128x128xf32, #tpu.memory_space<vmem>>, %arg2: memref<1x128xf32, #tpu.memory_space<vmem>>, %arg3: memref<128x256xf32, #tpu.memory_space<vmem>>, %arg4: memref<1x256xf32, #tpu.memory_space<vmem>>, %arg5: memref<4x8x128xf32, #tpu.memory_space<vmem>>, %arg6: memref<4x8x128xf32, #tpu.memory_space<vmem>>) attributes {dimension_semantics = [], scalar_prefetch = 0 : i64, scratch_operands = 0 : i64, tpu.core_type = #tpu.core_type<tc>} {
    %c0 = arith.constant 0 : index
    %c0_0 = arith.constant 0 : index
    %0 = vector.load %arg0[%c0, %c0_0] : memref<8x128xf32, #tpu.memory_space<vmem>>, vector<8x128xf32>
    %c0_1 = arith.constant 0 : index
    %c0_2 = arith.constant 0 : index
    %1 = vector.load %arg1[%c0_1, %c0_2] : memref<128x128xf32, #tpu.memory_space<vmem>>, vector<128x128xf32>
    %cst = arith.constant dense<0.000000e+00> : vector<8x128xf32>
    %2 = tpu.matmul %0, %1, %cst {dimension_numbers = #tpu.dot_dimension_numbers<[1], [0], [0], [1], [0, 0, 1, 1], [], []>} : vector<8x128xf32>, vector<128x128xf32>, vector<8x128xf32> -> vector<8x128xf32>
    %c0_3 = arith.constant 0 : index
    %c0_4 = arith.constant 0 : index
    %3 = vector.load %arg2[%c0_3, %c0_4] : memref<1x128xf32, #tpu.memory_space<vmem>>, vector<1x128xf32>
    %4 = vector.broadcast %3 : vector<1x128xf32> to vector<8x128xf32>
    %5 = arith.addf %2, %4 : vector<8x128xf32>
    %cst_5 = arith.constant 0.000000e+00 : f32
    %6 = vector.broadcast %cst_5 : f32 to vector<8x128xf32>
    %7 = arith.maximumf %5, %6 : vector<8x128xf32>
    %c0_6 = arith.constant 0 : index
    %c0_7 = arith.constant 0 : index
    %8 = vector.load %arg3[%c0_6, %c0_7] : memref<128x256xf32, #tpu.memory_space<vmem>>, vector<128x256xf32>
    %cst_8 = arith.constant dense<0.000000e+00> : vector<8x256xf32>
    %9 = tpu.matmul %7, %8, %cst_8 {dimension_numbers = #tpu.dot_dimension_numbers<[1], [0], [0], [1], [0, 0, 1, 1], [], []>} : vector<8x128xf32>, vector<128x256xf32>, vector<8x256xf32> -> vector<8x256xf32>
    %c0_9 = arith.constant 0 : index
    %c0_10 = arith.constant 0 : index
    %10 = vector.load %arg4[%c0_9, %c0_10] : memref<1x256xf32, #tpu.memory_space<vmem>>, vector<1x256xf32>
    %11 = vector.broadcast %10 : vector<1x256xf32> to vector<8x256xf32>
    %12 = arith.addf %9, %11 : vector<8x256xf32>
    %13 = vector.extract_strided_slice %12 {offsets = [0, 0], sizes = [8, 128], strides = [1, 1]} : vector<8x256xf32> to vector<8x128xf32>
    %14 = vector.extract_strided_slice %12 {offsets = [0, 128], sizes = [8, 128], strides = [1, 1]} : vector<8x256xf32> to vector<8x128xf32>
    %15 = math.exp %14 : vector<8x128xf32>
    %16 = vector.shape_cast %13 : vector<8x128xf32> to vector<1x8x128xf32>
    %17 = vector.shape_cast %15 : vector<8x128xf32> to vector<1x8x128xf32>
    %c0_11 = arith.constant 0 : index
    %c0_12 = arith.constant 0 : index
    %c0_13 = arith.constant 0 : index
    %18 = vector.load %arg5[%c0_11, %c0_12, %c0_13] : memref<4x8x128xf32, #tpu.memory_space<vmem>>, vector<4x8x128xf32>
    %19 = vector.broadcast %17 : vector<1x8x128xf32> to vector<4x8x128xf32>
    %20 = arith.mulf %19, %18 : vector<4x8x128xf32>
    %21 = vector.broadcast %16 : vector<1x8x128xf32> to vector<4x8x128xf32>
    %22 = arith.addf %21, %20 : vector<4x8x128xf32>
    %c0_14 = arith.constant 0 : index
    %c0_15 = arith.constant 0 : index
    %c0_16 = arith.constant 0 : index
    %23 = vector.load %arg6[%c0_14, %c0_15, %c0_16] : memref<4x8x128xf32, #tpu.memory_space<vmem>>, vector<4x8x128xf32>
    tpu.vector_store %arg6[%c0_14, %c0_15, %c0_16], %22 {strides = array<i32>} : memref<4x8x128xf32, #tpu.memory_space<vmem>>, vector<4x8x128xf32>,
    return
  }
}

</mosaic_0001>

<bundles_post_ra>
// kernel: tpu_custom_call.1
= control target key start
LH: loop header
LB: loop body
LE: loop exit
PB: predicated region body
PF: predicated region fallthrough
CT: control target
= control target key end

     0   :  { %11 = vsyncpa [#allocation3], 0  ;;  %s695_s0 = inlined_call_operand.hbm [shape: f32[8,128], index: 0, kind: input, shape index: {}]   ;;  %s696_s1 = inlined_call_operand.hbm [shape: f32[128,128], index: 1, kind: input, shape index: {}]   ;;  %s697_s2 = inlined_call_operand.vmem [shape: f32[1,128], index: 2, kind: input, shape index: {}]   ;;  %s698_s3 = inlined_call_operand.hbm [shape: f32[128,256], index: 3, kind: input, shape index: {}]   ;;  %s699_s4 = inlined_call_operand.vmem [shape: f32[1,256], index: 4, kind: input, shape index: {}]   ;;  %s700_s5 = inlined_call_operand.hbm [shape: f32[4,8,128], index: 5, kind: input, shape index: {}]   ;;  %s701_s6 = inlined_call_operand.hbm [shape: f32[4,8,128], index: 6, kind: output, shape index: {}]  }
   0x1   :  { %12 = vsyncpa [#allocation6], 0 }
   0x2   :  { %13 = vsyncpa [#allocation9], 0 }
   0x3   :  { %14 = vsyncpa [#allocation4], 0  ;;  %s565_s21 = smov [#allocation5]   ;;  %s447_s25 = scalar_lea.hbm %s696_s1, 2048 }
   0x4   :  { %s30_s22 = sshll.u32 %s565_s21, 4  ;;  %p448_p0 = scmp.ne.s32.totalorder %s696_s1, %s447_s25  ;;  %s31_s22 = int_to_ptr.vmem [resolvable:$true] %s30_s22 }
   0x5   :  { %p451_p1 = scmp.lt.u32.totalorder %s447_s25, %s696_s1 }
   0x7   :  { %p453_p2 = pnand %p451_p1, %p448_p0 }
   0x9   :  { %456 = shalt.err (!%p453_p2)
}
   0xa   :  { %s457_s30 = scalar_lea.vmem %s31_s22, 2048  ;;  %p462_p4 = scmp.lt.s32.totalorder %s31_s22, %s31_s22 }
   0xb   :  { %p458_p3 = scmp.ne.s32.totalorder %s31_s22, %s457_s30  ;;  %p463_p5 = scmp.lt.s32.totalorder %s457_s30, %s457_s30 }
   0xd   :  { %p464_p6 = por %p463_p5, %p462_p4 }
   0xf   :  { %p465_p7 = pnand %p464_p6, %p458_p3 }
  0x11   :  { %468 = shalt.err (!%p465_p7)
}
  0x12   :  { %s566_s7 = smov 128   ;;  %s567_s8 = smov 8  }
  0x13   :  { %36 = dma.hbm_to_vmem [thread:$0]  %s696_s1, 2048, %s31_s22, [#allocation6], %s566_s7, %s566_s7, %s567_s8  }
  0x14   :  { %s568_s11 = smov [#allocation2]   ;;  %s569_s13 = smov [#allocation7]  }
  0x15   :  { %s21_s12 = sshll.u32 %s568_s11, 4  ;;  %s44_s14 = sshll.u32 %s569_s13, 4  ;;  %s22_s12 = int_to_ptr.vmem [resolvable:$true] %s21_s12  ;;  %s45_s14 = int_to_ptr.vmem [resolvable:$true] %s44_s14 }
  0x16   :  { %s469_s17 = scalar_lea.hbm %s695_s0, 128 }
  0x17   :  { %p470_p8 = scmp.ne.s32.totalorder %s695_s0, %s469_s17  ;;  %p473_p9 = scmp.lt.u32.totalorder %s469_s17, %s695_s0 }
  0x19   :  { %p475_p10 = pnand %p473_p9, %p470_p8 }
  0x1b   :  { %478 = shalt.err (!%p475_p10)
}
  0x1c   :  { %s479_s1 = scalar_lea.vmem %s22_s12, 128  ;;  %p484_p12 = scmp.lt.s32.totalorder %s22_s12, %s22_s12 }
  0x1d   :  { %p480_p11 = scmp.ne.s32.totalorder %s22_s12, %s479_s1  ;;  %p485_p13 = scmp.lt.s32.totalorder %s479_s1, %s479_s1 }
  0x1f   :  { %p486_p0 = por %p485_p13, %p484_p12 }
  0x21   :  { %p487_p1 = pnand %p486_p0, %p480_p11 }
  0x23   :  { %490 = shalt.err (!%p487_p1)
}
  0x24   :  { %24 = dma.hbm_to_vmem [thread:$0]  %s695_s0, 128, %s22_s12, [#allocation3]  }
  0x25   :  { %s491_s26 = scalar_lea.hbm %s698_s3, 4096 }
  0x26   :  { %p492_p2 = scmp.ne.s32.totalorder %s698_s3, %s491_s26  ;;  %p495_p3 = scmp.lt.u32.totalorder %s491_s26, %s698_s3 }
  0x28   :  { %p497_p4 = pnand %p495_p3, %p492_p2 }
  0x2a   :  { %500 = shalt.err (!%p497_p4)
}
  0x2b   :  { %s501_s9 = scalar_lea.vmem %s45_s14, 4096  ;;  %p506_p6 = scmp.lt.s32.totalorder %s45_s14, %s45_s14 }
  0x2c   :  { %p502_p5 = scmp.ne.s32.totalorder %s45_s14, %s501_s9  ;;  %p507_p7 = scmp.lt.s32.totalorder %s501_s9, %s501_s9 }
  0x2e   :  { %p508_p8 = por %p507_p7, %p506_p6 }
  0x30   :  { %p509_p9 = pnand %p508_p8, %p502_p5 }
  0x32   :  { %512 = shalt.err (!%p509_p9)
}
  0x33   :  { %s570_s0 = smov 256   ;;  %s571_s10 = smov 16  }
  0x34   :  { %50 = dma.hbm_to_vmem [thread:$0]  %s698_s3, 4096, %s45_s14, [#allocation6], %s570_s0, %s570_s0, %s571_s10  }
  0x35   :  { %s572_s13 = smov [#allocation8]   ;;  %s513_s18 = scalar_lea.hbm %s700_s5, 512 }
  0x36   :  { %s58_s15 = sshll.u32 %s572_s13, 4  ;;  %p514_p10 = scmp.ne.s32.totalorder %s700_s5, %s513_s18  ;;  %s59_s15 = int_to_ptr.vmem [resolvable:$true] %s58_s15 }
  0x37   :  { %p517_p11 = scmp.lt.u32.totalorder %s513_s18, %s700_s5 }
  0x39   :  { %p519_p12 = pnand %p517_p11, %p514_p10 }
  0x3b   :  { %522 = shalt.err (!%p519_p12)
}
  0x3c   :  { %s523_s22 = scalar_lea.vmem %s59_s15, 512  ;;  %p528_p0 = scmp.lt.s32.totalorder %s59_s15, %s59_s15 }
  0x3d   :  { %p524_p13 = scmp.ne.s32.totalorder %s59_s15, %s523_s22  ;;  %p529_p1 = scmp.lt.s32.totalorder %s523_s22, %s523_s22 }
  0x3f   :  { %p530_p2 = por %p529_p1, %p528_p0 }
  0x41   :  { %p531_p3 = pnand %p530_p2, %p524_p13 }
  0x43   :  { %534 = shalt.err (!%p531_p3)
}
  0x44   :  { %64 = dma.hbm_to_vmem [thread:$0]  %s700_s5, 512, %s59_s15, [#allocation9], %s566_s7, %s566_s7, %s567_s8  }
  0x45   :  { %557 = dma.done.wait [#allocation3], 128  }
  0x46   :  { %558 = vsyncadd [#allocation3], 4294967168 }
  0x47   :  { %559 = dma.done.wait [#allocation6], 6144  }
  0x48   :  { %560 = vsyncadd [#allocation6], 4294961152 }
  0x49   :  { %561 = dma.done.wait [#allocation9], 512  }
  0x4a   :  { %562 = vsyncadd [#allocation9], 4294966784  ;;  %v573_v0 = vmov 0.0|0.0   ;;  %vm574_vm0 = vmmov 0   ;;  %v575_v1 = vmov 0.0   ;;  %v78_v2 = vld [vmem:[#allocation5] sm:$0xff] }
  0x4b   :  { %377 = vmatprep.subr.bf16.mxu0 %v573_v0  ;;  %374 = vmatprep.mubr.msk.f32.mxu0 %vm574_vm0, %v575_v1  ;;  %v79_v3 = vld [vmem:[#allocation5 + $0x8] sm:$0xff]  ;;  %v80_v4 = vld [vmem:[#allocation5 + $0x10] sm:$0xff]  ;;  %v81_v6 = vld [vmem:[#allocation5 + $0x18] sm:$0xff] }
  0x4c   :  { %280 = vmatprep.mubr.f32.mxu1 %v575_v1  ;;  %v378_v5 = vpack.c.bf16 %v79_v3, %v78_v2  ;;  %v381_v7 = vpack.c.bf16 %v81_v6, %v80_v4  ;;  %v82_v8 = vld [vmem:[#allocation5 + $0x20] sm:$0xff]  ;;  %v83_v9 = vld [vmem:[#allocation5 + $0x28] sm:$0xff]  ;;  %v84_v11 = vld [vmem:[#allocation5 + $0x30] sm:$0xff] }
  0x4d   :  { %v173_v10 = vld [vmem:[#allocation7 + $0x8] sm:$0xff]  ;;  %v85_v12 = vld [vmem:[#allocation5 + $0x38] sm:$0xff]  ;;  %v172_v14 = vld [vmem:[#allocation7] sm:$0xff]  ;;  %v384_v16 = vpack.c.bf16 %v83_v9, %v82_v8 }
  0x4e   :  { %379 = vmatpush3.bf16.msra.mxu0 %v378_v5  ;;  %v175_v13 = vld [vmem:[#allocation7 + $0x18] sm:$0xff]  ;;  %v174_v15 = vld [vmem:[#allocation7 + $0x10] sm:$0xff]  ;;  %v177_v19 = vld [vmem:[#allocation7 + $0x28] sm:$0xff]  ;;  %v387_v27 = vpack.c.bf16 %v85_v12, %v84_v11 }
  0x4f   :  { %380 = vmatprep.subr.bf16.mxu0 %v573_v0  ;;  %v401_v17 = vpack.c.bf16 %v175_v13, %v173_v10  ;;  %v403_v18 = vpack.c.bf16 %v174_v15, %v172_v14  ;;  %v179_v20 = vld [vmem:[#allocation7 + $0x38] sm:$0xff]  ;;  %v176_v21 = vld [vmem:[#allocation7 + $0x20] sm:$0xff]  ;;  %v178_v23 = vld [vmem:[#allocation7 + $0x30] sm:$0xff] }
  0x50   :  { %v405_v22 = vpack.c.bf16 %v179_v20, %v177_v19  ;;  %v181_v24 = vld [vmem:[#allocation7 + $0x48] sm:$0xff]  ;;  %v183_v25 = vld [vmem:[#allocation7 + $0x58] sm:$0xff]  ;;  %v407_v26 = vpack.c.bf16 %v178_v23, %v176_v21  ;;  %v86_v28 = vld [vmem:[#allocation5 + $0x40] sm:$0xff] }
  0x51   :  { %402 = vmatprep.subr.bf16.mxu1 %v401_v17  ;;  %v409_v29 = vpack.c.bf16 %v183_v25, %v181_v24  ;;  %v180_v30 = vld [vmem:[#allocation7 + $0x40] sm:$0xff]  ;;  %v182_v31 = vld [vmem:[#allocation7 + $0x50] sm:$0xff]  ;;  %v87_v32 = vld [vmem:[#allocation5 + $0x48] sm:$0xff] }
  0x52   :  { %382 = vmatpush3.bf16.msra.mxu0 %v381_v7  ;;  %404 = vmatpush1.bf16.msra.mxu1 %v403_v18  ;;  %v185_v33 = vld [vmem:[#allocation7 + $0x68] sm:$0xff]  ;;  %v187_v34 = vld [vmem:[#allocation7 + $0x78] sm:$0xff]  ;;  %v411_v35 = vpack.c.bf16 %v182_v31, %v180_v30  ;;  %v390_v36 = vpack.c.bf16 %v87_v32, %v86_v28  ;;  %v88_v37 = vld [vmem:[#allocation5 + $0x50] sm:$0xff] }
  0x53   :  { %383 = vmatprep.subr.bf16.mxu0 %v573_v0  ;;  %406 = vmatprep.subr.bf16.mxu1 %v405_v22  ;;  %v413_v38 = vpack.c.bf16 %v187_v34, %v185_v33  ;;  %v184_v39 = vld [vmem:[#allocation7 + $0x60] sm:$0xff]  ;;  %v186_v40 = vld [vmem:[#allocation7 + $0x70] sm:$0xff]  ;;  %v89_v41 = vld [vmem:[#allocation5 + $0x58] sm:$0xff] }
  0x54   :  { %v189_v42 = vld [vmem:[#allocation7 + $0x88] sm:$0xff]  ;;  %v191_v43 = vld [vmem:[#allocation7 + $0x98] sm:$0xff]  ;;  %v415_v44 = vpack.c.bf16 %v186_v40, %v184_v39  ;;  %v393_v45 = vpack.c.bf16 %v89_v41, %v88_v37  ;;  %v90_v46 = vld [vmem:[#allocation5 + $0x60] sm:$0xff] }
  0x55   :  { %v417_v47 = vpack.c.bf16 %v191_v43, %v189_v42  ;;  %v188_v48 = vld [vmem:[#allocation7 + $0x80] sm:$0xff]  ;;  %v190_v49 = vld [vmem:[#allocation7 + $0x90] sm:$0xff]  ;;  %v91_v50 = vld [vmem:[#allocation5 + $0x68] sm:$0xff] }
  0x56   :  { %385 = vmatpush3.bf16.msra.mxu0 %v384_v16  ;;  %408 = vmatpush1.bf16.msra.mxu1 %v407_v26  ;;  %v193_v51 = vld [vmem:[#allocation7 + $0xa8] sm:$0xff]  ;;  %v195_v52 = vld [vmem:[#allocation7 + $0xb8] sm:$0xff]  ;;  %v419_v53 = vpack.c.bf16 %v190_v49, %v188_v48  ;;  %v396_v54 = vpack.c.bf16 %v91_v50, %v90_v46  ;;  %v92_v55 = vld [vmem:[#allocation5 + $0x70] sm:$0xff]  ;;  %v206_v16 = vlaneseq }
  0x57   :  { %386 = vmatprep.subr.bf16.mxu0 %v573_v0  ;;  %410 = vmatprep.subr.bf16.mxu1 %v409_v29  ;;  %v421_v56 = vpack.c.bf16 %v195_v52, %v193_v51  ;;  %v192_v57 = vld [vmem:[#allocation7 + $0xa0] sm:$0xff]  ;;  %v194_v58 = vld [vmem:[#allocation7 + $0xb0] sm:$0xff]  ;;  %v93_v59 = vld [vmem:[#allocation5 + $0x78] sm:$0xff] }
  0x58   :  { %v197_v60 = vld [vmem:[#allocation7 + $0xc8] sm:$0xff]  ;;  %v199_v61 = vld [vmem:[#allocation7 + $0xd8] sm:$0xff]  ;;  %v423_v62 = vpack.c.bf16 %v194_v58, %v192_v57  ;;  %v399_v63 = vpack.c.bf16 %v93_v59, %v92_v55  ;;  %v196_v2 = vld [vmem:[#allocation7 + $0xc0] sm:$0xff]  ;;  %v207_v17 = vshrl.u32 %v206_v16, 7 }
  0x59   :  { %v425_v1 = vpack.c.bf16 %v199_v61, %v197_v60  ;;  %v198_v3 = vld [vmem:[#allocation7 + $0xd0] sm:$0xff]  ;;  %v77_v5 = vld [vmem:[#allocation2] sm:$0xff]  ;;  %v201_v6 = vld [vmem:[#allocation7 + $0xe8] sm:$0xff] }
  0x5a   :  { %388 = vmatpush3.bf16.msra.mxu0 %v387_v27  ;;  %412 = vmatpush1.bf16.msra.mxu1 %v411_v35  ;;  %v427_v4 = vpack.c.bf16 %v198_v3, %v196_v2  ;;  %v203_v7 = vld [vmem:[#allocation7 + $0xf8] sm:$0xff]  ;;  %v200_v9 = vld [vmem:[#allocation7 + $0xe0] sm:$0xff]  ;;  %v202_v10 = vld [vmem:[#allocation7 + $0xf0] sm:$0xff]  ;;  %v212_v18 = vsub.s32 1, %v207_v17  ;;  %v208_v25 = vsub.s32 0, %v207_v17 }
  0x5b   :  { %389 = vmatprep.subr.bf16.mxu0 %v573_v0  ;;  %414 = vmatprep.subr.bf16.mxu1 %v413_v38  ;;  %v429_v8 = vpack.c.bf16 %v203_v7, %v201_v6  ;;  %v431_v11 = vpack.c.bf16 %v202_v10, %v200_v9  ;;  %v324_v12 = vld [vmem:[%s697_s2] ss:$0 sm:$0xff]  ;;  %v289_v27 = vld [vmem:[#allocation8] sm:$0xff]  ;;  %v290_v28 = vld [vmem:[#allocation8 + $0x8] sm:$0xff]  ;;  %s576_s2 = smov [#allocation10]  }
  0x5c   :  { %v204_v19 = vld [vmem:[%s699_s4] sm:$0x3]  ;;  %v291_v29 = vld [vmem:[#allocation8 + $0x10] sm:$0xff]  ;;  %s310_s26 = sshll.u32 %s576_s2, 4  ;;  %s311_s26 = int_to_ptr.vmem [resolvable:$true] %s310_s26 }
  0x5d   :  { %v213_v20 = vrot.slane %v204_v19, %v212_v18  ;;  %v209_v26 = vrot.slane %v204_v19, %v208_v25  ;;  %v292_v30 = vld [vmem:[#allocation8 + $0x18] sm:$0xff]  ;;  %s535_s4 = scalar_lea.vmem %s311_s26, 512  ;;  %p540_p5 = scmp.lt.s32.totalorder %s311_s26, %s311_s26 }
  0x5e   :  { %391 = vmatpush3.bf16.msra.mxu0 %v390_v36  ;;  %416 = vmatpush1.bf16.msra.mxu1 %v415_v44  ;;  %p536_p4 = scmp.ne.s32.totalorder %s311_s26, %s535_s4  ;;  %p541_p6 = scmp.lt.s32.totalorder %s535_s4, %s535_s4 }
  0x5f   :  { %392 = vmatprep.subr.bf16.mxu0 %v573_v0  ;;  %418 = vmatprep.subr.bf16.mxu1 %v417_v47 }
  0x60   :  { %p542_p7 = por %p541_p6, %p540_p5 }
  0x62   :  { %394 = vmatpush3.bf16.msra.mxu0 %v393_v45  ;;  %420 = vmatpush1.bf16.msra.mxu1 %v419_v53  ;;  %p543_p8 = pnand %p542_p7, %p536_p4 }
  0x63   :  { %395 = vmatprep.subr.bf16.mxu0 %v573_v0  ;;  %422 = vmatprep.subr.bf16.mxu1 %v421_v56 }
  0x66   :  { %397 = vmatpush3.bf16.msra.mxu0 %v396_v54  ;;  %424 = vmatpush1.bf16.msra.mxu1 %v423_v62 }
  0x67   :  { %398 = vmatprep.subr.bf16.mxu0 %v573_v0  ;;  %426 = vmatprep.subr.bf16.mxu1 %v425_v1 }
  0x6a   :  { %400 = vmatpush3.bf16.msra.mxu0 %v399_v63  ;;  %428 = vmatpush1.bf16.msra.mxu1 %v427_v4 }
  0x6b   :  { %430 = vmatprep.subr.bf16.mxu1 %v429_v8 }
  0x6d   :  { %375 = vmatmul.mubr.f32.vlgmr.msra.gmra.mrb[0].mxu0 %v77_v5 }
  0x6e   :  { %432 = vmatpush1.bf16.msra.mxu1 %v431_v11 }
 0x140   :  { %v167_v0 = vpop.f32.mrb[0].mxu0 }
 0x141   :  { %v168_v13 = vadd.f32 %v324_v12, %v167_v0  ;;  %v376_v14 = vpop.f32.mrb[1].mxu0 }
 0x143   :  { %v171_v15 = vmax.f32 %v168_v13, 0.0 }
 0x145   :  { %281 = vmatmul.mubr.f32.vlgmr.msra.gmra.mrb[0].mxu1 %v171_v15 }
 0x218   :  { %v282_v21 = vpop.f32.mrb[0].mxu1 }
 0x219   :  { %v284_v22 = vpop.f32.mrb[1].mxu1  ;;  %v283_v32 = vadd.f32 %v282_v21, %v209_v26 }
 0x21a   :  { %v285_v23 = vadd.f32 %v284_v22, %v213_v20 }
 0x21c   :  { %v287_v24 = vmul.f32 1.442695, %v285_v23 }
 0x21e   :  { %445 = vpow2.f32 %v287_v24 }
 0x228   :  { %v446_v31 = vpop.eup %445 }
 0x229   :  { %v293_v33 = vmul.f32 %v446_v31, %v289_v27  ;;  %v294_v34 = vmul.f32 %v446_v31, %v290_v28  ;;  %v295_v35 = vmul.f32 %v446_v31, %v291_v29  ;;  %v296_v36 = vmul.f32 %v446_v31, %v292_v30 }
 0x22b   :  { %v297_v37 = vadd.f32 %v293_v33, %v283_v32  ;;  %v298_v38 = vadd.f32 %v294_v34, %v283_v32  ;;  %v299_v39 = vadd.f32 %v295_v35, %v283_v32  ;;  %v300_v40 = vadd.f32 %v296_v36, %v283_v32 }
 0x22d   :  { %301 = vst [vmem:[#allocation10] sm:$0xff] %v297_v37  ;;  %302 = vst [vmem:[#allocation10 + $0x8] sm:$0xff] %v298_v38 }
 0x22e   :  { %303 = vst [vmem:[#allocation10 + $0x10] sm:$0xff] %v299_v39  ;;  %304 = vst [vmem:[#allocation10 + $0x18] sm:$0xff] %v300_v40 }
 0x22f   :  { %546 = shalt.err (!%p543_p8)
}
 0x230   :  { %s547_s29 = scalar_lea.hbm %s701_s6, 512 }
 0x231   :  { %p548_p9 = scmp.ne.s32.totalorder %s701_s6, %s547_s29  ;;  %p551_p10 = scmp.lt.u32.totalorder %s547_s29, %s701_s6 }
 0x233   :  { %p553_p11 = pnand %p551_p10, %p548_p9 }
 0x235   :  { %556 = shalt.err (!%p553_p11)
}
 0x236   :  { %316 = dma.vmem_to_hbm [thread:$0]  %s311_s26, 512, %s701_s6, [#allocation4], %s566_s7, %s566_s7, %s567_s8  }
 0x237   :  { %563 = dma.done.wait [#allocation4], 512  }
 0x238   :  { %564 = vsyncadd [#allocation4], 4294966784 }
 0x239   :  { %320 = vsyncpa [#allocation3], 1 }
 0x23a   :  { %321 = vsyncpa [#allocation6], 1 }
 0x23b   :  { %322 = vsyncpa [#allocation9], 1 }
 0x23c   :  { %323 = vsyncpa [#allocation4], 1 }

</bundles_post_ra>
